<compile_context>
chip_gen: v7x
topology: tpu7x:2x2x1
jax: 0.10.0
libtpu: 0.0.40
codegen_flags: <defaults>
</compile_context>

<pallas_src>
import jax
import jax.numpy as jnp
from jax.experimental import pallas as pl
from jax.experimental.pallas import tpu as pltpu


# ----------------------------------------------------------------------------
# helpers
# ----------------------------------------------------------------------------
def _round_up(x, m):
    return (x + m - 1) // m * m


def _cdiv(a, b):
    return (a + b - 1) // b


# ----------------------------------------------------------------------------
# small path: whole problem resident in VMEM, single un-pipelined body
# ----------------------------------------------------------------------------
def _linear_small_kernel(x_ref, w_ref, b_ref, o_ref):
    x = x_ref[...].astype(jnp.bfloat16)          # bf16 into the MXU
    w = w_ref[...].astype(jnp.bfloat16)
    scores = jnp.dot(x, w, preferred_element_type=jnp.float32)   # f32 accum
    o_ref[...] = scores + b_ref[...]                              # f32 bias


def _linear_policy_small(state, w, b):
    B, D = state.shape
    _, A = w.shape
    return pl.pallas_call(
        _linear_small_kernel,
        out_shape=jax.ShapeDtypeStruct((B, A), jnp.float32),
        in_specs=[
            pl.BlockSpec(memory_space=pltpu.MemorySpace.VMEM),
            pl.BlockSpec(memory_space=pltpu.MemorySpace.VMEM),
            pl.BlockSpec(memory_space=pltpu.MemorySpace.VMEM),
        ],
        out_specs=pl.BlockSpec(memory_space=pltpu.MemorySpace.VMEM),
    )(state.astype(jnp.float32), w.astype(jnp.float32), b.astype(jnp.float32))


# ----------------------------------------------------------------------------
# tiled path: (i, j, k) matmul + bias, accumulating directly in the out block
# ----------------------------------------------------------------------------
def _linear_tiled_kernel(x_ref, w_ref, b_ref, o_ref):
    k = pl.program_id(2)
    partial = jnp.dot(
        x_ref[...].astype(jnp.bfloat16),
        w_ref[...].astype(jnp.bfloat16),
        preferred_element_type=jnp.float32,
    )

    @pl.when(k == 0)
    def _():
        o_ref[...] = partial

    @pl.when(k > 0)
    def _():
        o_ref[...] += partial

    @pl.when(k == pl.num_programs(2) - 1)
    def _():
        o_ref[...] += b_ref[...]


def _linear_policy_tiled(state, w, b):
    B, D = state.shape
    _, A = w.shape
    x = state.astype(jnp.float32)
    wf = w.astype(jnp.float32)
    bf = b.astype(jnp.float32)

    # Adaptive tiles: big enough to amortize per-step overhead, small enough
    # to double-buffer inside v5e's 16 MiB default / v7x's 64 MiB physical.
    TM = min(512, _round_up(B, 8))
    TN = min(512, _round_up(A, 128))
    TK = D if D <= 1024 else 1024          # single K step when D fits

    # v7x megacore: keep >= 2 blocks along a parallel axis when possible.
    if _cdiv(B, TM) * _cdiv(A, TN) < 2:
        if B >= 16:
            TM = _round_up(_cdiv(B, 2), 8)
        elif A >= 256:
            TN = _round_up(_cdiv(A, 2), 128)

    # Only the reduction (K) axis ever needs an explicit zero pad; B/A
    # overhang is handled by partial blocks (garbage rows/cols never written).
    Dp = _round_up(D, TK)
    if Dp != D:
        x = jnp.pad(x, ((0, 0), (0, Dp - D)))
        wf = jnp.pad(wf, ((0, Dp - D), (0, 0)))

    grid = (_cdiv(B, TM), _cdiv(A, TN), Dp // TK)
    return pl.pallas_call(
        _linear_tiled_kernel,
        out_shape=jax.ShapeDtypeStruct((B, A), jnp.float32),
        grid=grid,
        in_specs=[
            pl.BlockSpec((TM, TK), lambda i, j, k: (i, k)),
            pl.BlockSpec((TK, TN), lambda i, j, k: (k, j)),
            pl.BlockSpec((1, TN), lambda i, j, k: (0, j)),
        ],
        out_specs=pl.BlockSpec((TM, TN), lambda i, j, k: (i, j)),
        compiler_params=pltpu.CompilerParams(
            dimension_semantics=("parallel", "parallel", "arbitrary"),
            vmem_limit_bytes=48 * 1024 * 1024,   # < v7x 64 MiB physical
        ),
    )(x, wf, bf)


def linear_policy(state, w, b):
    """Pallas-backed linear policy: state (B, D) -> scores (B, A)."""
    B, D = state.shape
    D2, A = w.shape
    assert D == D2 and b.shape == (1, A)
    f32_bytes = 4 * (B * D + D * A + B * A)
    if f32_bytes <= 8 * 1024 * 1024:        # whole problem fits in VMEM
        return _linear_policy_small(state, w, b)
    return _linear_policy_tiled(state, w, b)


# ----------------------------------------------------------------------------
# NoopLearner: pure pass-through wrapper (matches the PyTorch module)
# ----------------------------------------------------------------------------
class NoopLearner:
    """JAX/Pallas equivalent of the PyTorch NoopLearner: pure pass-through."""

    def __init__(self, policy):
        self.policy = policy

    def __call__(self, state):
        # forward(state) -> self.policy(state)
        return self.policy(state)

    def get_objective(self, loss):
        return 0.0


if __name__ == "__main__":
    # --- small shapes (consistent with the module): batch=2, dim=32, A=16 ---
    B, D, A = 2, 32, 16
    key = jax.random.PRNGKey(0)
    k_state, k_w, k_b = jax.random.split(key, 3)

    state = jax.random.normal(k_state, (B, D), dtype=jnp.float32)
    w = jax.random.normal(k_w, (D, A), dtype=jnp.float32) * 0.1
    b = jax.random.normal(k_b, (1, A), dtype=jnp.float32) * 0.1

    policy = lambda s: linear_policy(s, w, b)
    learner = NoopLearner(policy)

    out = jax.block_until_ready(learner(state))
    ref = state @ w + b
    assert out.shape == (B, A)
    # bf16 MXU inputs (f32 accumulation) -> relaxed tolerance vs f32 reference
    assert jnp.allclose(out, ref, atol=5e-2, rtol=5e-2)
    assert learner.get_objective(123.0) == 0.0

    # --- medium size: fits in VMEM, single-block (no grid) path ---
    B2, D2, A2 = 512, 1024, 512
    k1, k2, k3 = jax.random.split(jax.random.PRNGKey(1), 3)
    s2 = jax.random.normal(k1, (B2, D2), dtype=jnp.float32)
    w2 = jax.random.normal(k2, (D2, A2), dtype=jnp.float32) * 0.05
    b2 = jax.random.normal(k3, (1, A2), dtype=jnp.float32) * 0.05
    out2 = jax.block_until_ready(linear_policy(s2, w2, b2))
    ref2 = jnp.dot(s2, w2, preferred_element_type=jnp.float32) + b2
    assert out2.shape == (B2, A2)
    assert jnp.allclose(out2, ref2, atol=5e-2, rtol=1e-2)

    # --- large size: exercises the tiled (i, j, k) path ---
    B3, D3, A3 = 1024, 2048, 512
    k4, k5, k6 = jax.random.split(jax.random.PRNGKey(2), 3)
    s3 = jax.random.normal(k4, (B3, D3), dtype=jnp.float32)
    w3 = jax.random.normal(k5, (D3, A3), dtype=jnp.float32) * 0.03
    b3 = jax.random.normal(k6, (1, A3), dtype=jnp.float32) * 0.03
    out3 = jax.block_until_ready(linear_policy(s3, w3, b3))
    ref3 = jnp.dot(s3, w3, preferred_element_type=jnp.float32) + b3
    assert out3.shape == (B3, A3)
    assert jnp.allclose(out3, ref3, atol=5e-2, rtol=1e-2)

    print("KERNEL_OK")
</pallas_src>

<mosaic_0001>
module attributes {stable_mosaic.version = 11 : i64} {
  func.func @_linear_small_kernel(%arg0: memref<2x32xf32, #tpu.memory_space<vmem>>, %arg1: memref<32x16xf32, #tpu.memory_space<vmem>>, %arg2: memref<1x16xf32, #tpu.memory_space<vmem>>, %arg3: memref<2x16xf32, #tpu.memory_space<vmem>>) attributes {dimension_semantics = [], scalar_prefetch = 0 : i64, scratch_operands = 0 : i64, tpu.core_type = #tpu.core_type<tc>} {
    %c0 = arith.constant 0 : index
    %c0_0 = arith.constant 0 : index
    %0 = vector.load %arg0[%c0, %c0_0] : memref<2x32xf32, #tpu.memory_space<vmem>>, vector<2x32xf32>
    %1 = arith.truncf %0 : vector<2x32xf32> to vector<2x32xbf16>
    %c0_1 = arith.constant 0 : index
    %c0_2 = arith.constant 0 : index
    %2 = vector.load %arg1[%c0_1, %c0_2] : memref<32x16xf32, #tpu.memory_space<vmem>>, vector<32x16xf32>
    %3 = arith.truncf %2 : vector<32x16xf32> to vector<32x16xbf16>
    %cst = arith.constant dense<0.000000e+00> : vector<2x16xf32>
    %4 = tpu.matmul %1, %3, %cst {dimension_numbers = #tpu.dot_dimension_numbers<[1], [0], [0], [1], [0, 0, 1, 1], [], []>} : vector<2x32xbf16>, vector<32x16xbf16>, vector<2x16xf32> -> vector<2x16xf32>
    %c0_3 = arith.constant 0 : index
    %c0_4 = arith.constant 0 : index
    %5 = vector.load %arg2[%c0_3, %c0_4] : memref<1x16xf32, #tpu.memory_space<vmem>>, vector<1x16xf32>
    %6 = vector.broadcast %5 : vector<1x16xf32> to vector<2x16xf32>
    %7 = arith.addf %4, %6 : vector<2x16xf32>
    %c0_5 = arith.constant 0 : index
    %c0_6 = arith.constant 0 : index
    %8 = vector.load %arg3[%c0_5, %c0_6] : memref<2x16xf32, #tpu.memory_space<vmem>>, vector<2x16xf32>
    tpu.vector_store %arg3[%c0_5, %c0_6], %7 {strides = array<i32>} : memref<2x16xf32, #tpu.memory_space<vmem>>, vector<2x16xf32>,
    return
  }
}

</mosaic_0001>

<bundles_post_ra>
// kernel: tpu_custom_call.1
= control target key start
LH: loop header
LB: loop body
LE: loop exit
PB: predicated region body
PF: predicated region fallthrough
CT: control target
= control target key end

     0   :  { %v131_v3 = vmov 0.0   ;;  %vm132_vm0 = vmmov 0   ;;  %s184_s0 = inlined_call_operand.vmem [shape: f32[2,32], index: 0, kind: input, shape index: {}]   ;;  %s185_s1 = inlined_call_operand.vmem [shape: f32[32,16], index: 1, kind: input, shape index: {}]   ;;  %s186_s2 = inlined_call_operand.vmem [shape: f32[1,16], index: 2, kind: input, shape index: {}]   ;;  %s187_s3 = inlined_call_operand.hbm [shape: f32[2,16], index: 3, kind: output, shape index: {}]  }
   0x1   :  { %v18_v0 = vld [vmem:[%s185_s1] sm:$0xff]  ;;  %v19_v1 = vld [vmem:[%s185_s1 + $0x8] sm:$0xff]  ;;  %v20_v2 = vld [vmem:[%s185_s1 + $0x10] sm:$0xff]  ;;  %96 = vmatprep.subr.bf16.mxu0 %v131_v3  ;;  %100 = vmatprep.mubr.msk.bf16.mxu0 %vm132_vm0, %v131_v3 }
   0x2   :  { %v22_v4 = vpack.c.bf16 %v19_v1, %v18_v0  ;;  %v21_v5 = vld [vmem:[%s185_s1 + $0x18] sm:$0xff] }
   0x3   :  { %8 = vsyncpa [#allocation3], 0  ;;  %v23_v6 = vpack.c.bf16 %v21_v5, %v20_v2  ;;  %v16_v7 = vld [vmem:[%s184_s0] sm:$0x3]  ;;  %vm31_vm1 = vcmask 261120   ;;  %s133_s24 = smov [#allocation2]  }
   0x4   :  { %97 = vmatpush3.bf16.msra.mxu0 %v22_v4  ;;  %v17_v8 = vpack.c.bf16 %v16_v7, %v16_v7  ;;  %v91_v9 = vld [vmem:[%s186_s2] ss:$0 sm:$0xff]  ;;  %s83_s1 = sshll.u32 %s133_s24, 4  ;;  %vm75_vm2 = vcmask 123904   ;;  %s84_s1 = int_to_ptr.vmem [resolvable:$true] %s83_s1 }
   0x5   :  { %98 = vmatprep.subr.bf16.mxu0 %v131_v3  ;;  %s107_s0 = scalar_lea.vmem %s84_s1, 32  ;;  %p112_p1 = scmp.lt.s32.totalorder %s84_s1, %s84_s1 }
   0x6   :  { %p108_p0 = scmp.ne.s32.totalorder %s84_s1, %s107_s0  ;;  %p113_p2 = scmp.lt.s32.totalorder %s107_s0, %s107_s0 }
   0x8   :  { %99 = vmatpush3.bf16.msra.mxu0 %v23_v6  ;;  %p114_p3 = por %p113_p2, %p112_p1 }
   0xa   :  { %p115_p4 = pnand %p114_p3, %p108_p0 }
   0xb   :  { %101 = vmatmul.mubr.msk.bf16.vlgmr.msra.gmra.mrb[0].mxu0 %vm31_vm1, %v17_v8 }
  0xde   :  { %v69_v10 = vpop.f32.mrb[0].mxu0 }
  0xdf   :  { %v70_v11 = vadd.f32 %v91_v9, %v69_v10  ;;  %v102_v12 = vpop.f32.mrb[1].mxu0 }
  0xe0   :  { %v72_v13 = vpop.f32.mrb[2].mxu0 }
  0xe1   :  { %v103_v14 = vpop.f32.mrb[3].mxu0  ;;  %76 = vst.msk [vmem:[#allocation2] sm:$0x3] %vm75_vm2, %v70_v11 }
  0xe2   :  { %118 = shalt.err (!%p115_p4)
}
  0xe3   :  { %s119_s2 = scalar_lea.hbm %s187_s3, 32 }
  0xe4   :  { %p120_p5 = scmp.ne.s32.totalorder %s187_s3, %s119_s2  ;;  %p123_p6 = scmp.lt.u32.totalorder %s119_s2, %s187_s3 }
  0xe6   :  { %p125_p7 = pnand %p123_p6, %p120_p5 }
  0xe8   :  { %128 = shalt.err (!%p125_p7)
}
  0xe9   :  { %86 = dma.vmem_to_hbm [thread:$0]  %s84_s1, 32, %s187_s3, [#allocation3]  }
  0xea   :  { %129 = dma.done.wait [#allocation3], 32  }
  0xeb   :  { %130 = vsyncadd [#allocation3], 4294967264 }
  0xec   :  { %90 = vsyncpa [#allocation3], 1 }

</bundles_post_ra>
